<compile_context>
chip_gen: v7x
topology: tpu7x:2x2x1
jax: 0.10.0
libtpu: 0.0.40
codegen_flags: <defaults>
</compile_context>

<pallas_src>
import jax
import jax.numpy as jnp
from jax.experimental import pallas as pl
from jax.experimental.pallas import tpu as pltpu


# ---------------------------------------------------------------------------
# Kernel
# ---------------------------------------------------------------------------
def _local_affine_kernel(s_ref, o_ref):
    # s_ref: (16, TN) packed slab; o_ref: (3, TN).
    s = s_ref[...].astype(jnp.float32)          # f32 accumulation (bf16-safe)
    p0 = s[9, :]
    p1 = s[10, :]
    p2 = s[11, :]
    for j in range(3):                          # fully unrolled VPU FMA chain
        acc = s[12 + j, :]                      # start from bias
        acc = acc + s[3 * j + 0, :] * p0
        acc = acc + s[3 * j + 1, :] * p1
        acc = acc + s[3 * j + 2, :] * p2
        o_ref[j, :] = acc.astype(o_ref.dtype)   # direct row store, no stack


# ---------------------------------------------------------------------------
# Tiling helpers
# ---------------------------------------------------------------------------
def _round_up(x: int, m: int) -> int:
    return ((x + m - 1) // m) * m


def _choose_tiling(n: int, max_tile: int) -> tuple[int, int]:
    """Pick a lane tile (multiple of 128) and the padded point count."""
    n128 = _round_up(max(n, 1), 128)
    if n128 <= 128:
        tile = 128
    elif n128 <= 2 * max_tile:
        # aim for >= 2 grid steps (keeps both v7x TensorCores busy)
        tile = min(max_tile, _round_up(pl.cdiv(n128, 2), 128))
    else:
        tile = max_tile
    n_pad = _round_up(n128, tile)
    return tile, n_pad


# ---------------------------------------------------------------------------
# Packed-layout entry point (use this inside optimization loops to avoid
# paying the relayout HBM traffic on every call).
# ---------------------------------------------------------------------------
def local_affine_forward_packed(slab: jax.Array, *, tile_n: int,
                                out_dtype=None) -> jax.Array:
    """slab: (16, n_pad) packed A/p/b slab (n_pad % tile_n == 0) -> (3, n_pad)."""
    n_pad = slab.shape[1]
    assert slab.shape[0] == 16 and n_pad % tile_n == 0
    out_dtype = out_dtype or slab.dtype

    elem_bytes = max(jnp.dtype(slab.dtype).itemsize, jnp.dtype(out_dtype).itemsize)
    # double-buffered input (16 sublanes) + output (padded to 8 sublanes)
    vmem_bytes = 2 * (16 + 8) * elem_bytes * tile_n
    vmem_limit = min(100 << 20, max(32 << 20, vmem_bytes + (4 << 20)))

    grid = (n_pad // tile_n,)
    return pl.pallas_call(
        _local_affine_kernel,
        out_shape=jax.ShapeDtypeStruct((3, n_pad), out_dtype),
        grid_spec=pltpu.PrefetchScalarGridSpec(
            num_scalar_prefetch=0,
            grid=grid,
            in_specs=[pl.BlockSpec((16, tile_n), lambda i: (0, i))],
            out_specs=pl.BlockSpec((3, tile_n), lambda i: (0, i)),
        ),
        compiler_params=pltpu.CompilerParams(
            dimension_semantics=("parallel",),
            vmem_limit_bytes=vmem_limit,
        ),
    )(slab)


# ---------------------------------------------------------------------------
# Convenience wrapper matching the PyTorch forward() signature.
# ---------------------------------------------------------------------------
def local_affine_forward(A: jax.Array, b: jax.Array, points: jax.Array,
                         *, max_tile_n: int = 65536) -> jax.Array:
    """A: (N,3,3), b: (N,3), points: (N,3) -> (N,3)."""
    n = points.shape[0]
    assert A.shape == (n, 3, 3) and b.shape == (n, 3)
    dtype = points.dtype

    tile_n, n_pad = _choose_tiling(n, max_tile_n)

    # Build the packed (16, N) slab directly in row-major (16, N) form: one
    # concat of already-transposed pieces (cheap XLA relayout, all mem-bound).
    # If this runs inside an ICP / Amberg optimization loop, keep A/b/points
    # in this layout across iterations and call local_affine_forward_packed.
    slab = jnp.concatenate(
        [A.reshape(n, 9).astype(dtype).T,        # rows 0..8
         points.astype(dtype).T,                 # rows 9..11
         b.astype(dtype).T,                      # rows 12..14
         jnp.zeros((1, n), dtype)],              # row 15 (pad)
        axis=0)                                  # -> (16, N)
    if n_pad > n:
        slab = jnp.pad(slab, ((0, 0), (0, n_pad - n)))

    out_t = local_affine_forward_packed(slab, tile_n=tile_n, out_dtype=dtype)
    return out_t[:, :n].T                        # back to (N, 3)


# ---------------------------------------------------------------------------
# Self-test
# ---------------------------------------------------------------------------
if __name__ == "__main__":
    n_points = 300                               # non-multiple of 128: tests padding
    key = jax.random.PRNGKey(0)
    k_a, k_b, k_p = jax.random.split(key, 3)

    # Parameters per LocalAffine.__init__: A = eye(3) tiled, b = zeros, plus a
    # small deterministic perturbation so the kernel math is non-trivial.
    A = jnp.tile(jnp.eye(3, dtype=jnp.float32), (n_points, 1, 1))
    A = A + 0.01 * jax.random.normal(k_a, (n_points, 3, 3), dtype=jnp.float32)
    b = 0.01 * jax.random.normal(k_b, (n_points, 3), dtype=jnp.float32)
    points = jax.random.normal(k_p, (n_points, 3), dtype=jnp.float32)

    out = local_affine_forward(A, b, points)
    out = jax.block_until_ready(out)

    # Pure-JAX reference of torch.bmm(A, p[...,None]).squeeze(-1) + b
    ref = jnp.einsum("njk,nk->nj", A, points) + b
    assert out.shape == (n_points, 3)
    assert jnp.allclose(out, ref, atol=1e-5, rtol=1e-5)

    # TODO(synk): stiffness / loss_stiffness (edge-gather + reduction) are not
    # part of forward() and are left to plain JAX if needed.
    print("KERNEL_OK")
</pallas_src>

<mosaic_0001>
module attributes {stable_mosaic.version = 11 : i64} {
  func.func @_local_affine_kernel(%arg0: i32, %arg1: memref<16x256xf32, #tpu.memory_space<vmem>>, %arg2: memref<3x256xf32, #tpu.memory_space<vmem>>) attributes {dimension_semantics = [#tpu.dimension_semantics<parallel>], iteration_bounds = array<i64: 2>, scalar_prefetch = 0 : i64, scratch_operands = 0 : i64, tpu.core_type = #tpu.core_type<tc>, window_params = [{transform_indices = @transform_0, window_bounds = array<i64: 16, 256>}, {transform_indices = @transform_1, window_bounds = array<i64: 3, 256>}]} {
    %c0 = arith.constant 0 : index
    %c0_0 = arith.constant 0 : index
    %0 = vector.load %arg1[%c0, %c0_0] : memref<16x256xf32, #tpu.memory_space<vmem>>, vector<16x256xf32>
    %1 = vector.extract_strided_slice %0 {offsets = [9, 0], sizes = [1, 256], strides = [1, 1]} : vector<16x256xf32> to vector<1x256xf32>
    %2 = vector.shape_cast %1 : vector<1x256xf32> to vector<256xf32>
    %3 = vector.extract_strided_slice %0 {offsets = [10, 0], sizes = [1, 256], strides = [1, 1]} : vector<16x256xf32> to vector<1x256xf32>
    %4 = vector.shape_cast %3 : vector<1x256xf32> to vector<256xf32>
    %5 = vector.extract_strided_slice %0 {offsets = [11, 0], sizes = [1, 256], strides = [1, 1]} : vector<16x256xf32> to vector<1x256xf32>
    %6 = vector.shape_cast %5 : vector<1x256xf32> to vector<256xf32>
    %7 = vector.extract_strided_slice %0 {offsets = [12, 0], sizes = [1, 256], strides = [1, 1]} : vector<16x256xf32> to vector<1x256xf32>
    %8 = vector.shape_cast %7 : vector<1x256xf32> to vector<256xf32>
    %9 = vector.extract_strided_slice %0 {offsets = [0, 0], sizes = [1, 256], strides = [1, 1]} : vector<16x256xf32> to vector<1x256xf32>
    %10 = vector.shape_cast %9 : vector<1x256xf32> to vector<256xf32>
    %11 = arith.mulf %10, %2 : vector<256xf32>
    %12 = arith.addf %8, %11 : vector<256xf32>
    %13 = vector.extract_strided_slice %0 {offsets = [1, 0], sizes = [1, 256], strides = [1, 1]} : vector<16x256xf32> to vector<1x256xf32>
    %14 = vector.shape_cast %13 : vector<1x256xf32> to vector<256xf32>
    %15 = arith.mulf %14, %4 : vector<256xf32>
    %16 = arith.addf %12, %15 : vector<256xf32>
    %17 = vector.extract_strided_slice %0 {offsets = [2, 0], sizes = [1, 256], strides = [1, 1]} : vector<16x256xf32> to vector<1x256xf32>
    %18 = vector.shape_cast %17 : vector<1x256xf32> to vector<256xf32>
    %19 = arith.mulf %18, %6 : vector<256xf32>
    %20 = arith.addf %16, %19 : vector<256xf32>
    %c0_1 = arith.constant 0 : index
    %c0_2 = arith.constant 0 : index
    %21 = vector.load %arg2[%c0_1, %c0_2] : memref<3x256xf32, #tpu.memory_space<vmem>>, vector<1x256xf32>
    %22 = vector.shape_cast %21 : vector<1x256xf32> to vector<256xf32>
    %23 = vector.shape_cast %20 : vector<256xf32> to vector<1x256xf32>
    tpu.vector_store %arg2[%c0_1, %c0_2], %23 {strides = array<i32>} : memref<3x256xf32, #tpu.memory_space<vmem>>, vector<1x256xf32>,
    %24 = vector.extract_strided_slice %0 {offsets = [13, 0], sizes = [1, 256], strides = [1, 1]} : vector<16x256xf32> to vector<1x256xf32>
    %25 = vector.shape_cast %24 : vector<1x256xf32> to vector<256xf32>
    %26 = vector.extract_strided_slice %0 {offsets = [3, 0], sizes = [1, 256], strides = [1, 1]} : vector<16x256xf32> to vector<1x256xf32>
    %27 = vector.shape_cast %26 : vector<1x256xf32> to vector<256xf32>
    %28 = arith.mulf %27, %2 : vector<256xf32>
    %29 = arith.addf %25, %28 : vector<256xf32>
    %30 = vector.extract_strided_slice %0 {offsets = [4, 0], sizes = [1, 256], strides = [1, 1]} : vector<16x256xf32> to vector<1x256xf32>
    %31 = vector.shape_cast %30 : vector<1x256xf32> to vector<256xf32>
    %32 = arith.mulf %31, %4 : vector<256xf32>
    %33 = arith.addf %29, %32 : vector<256xf32>
    %34 = vector.extract_strided_slice %0 {offsets = [5, 0], sizes = [1, 256], strides = [1, 1]} : vector<16x256xf32> to vector<1x256xf32>
    %35 = vector.shape_cast %34 : vector<1x256xf32> to vector<256xf32>
    %36 = arith.mulf %35, %6 : vector<256xf32>
    %37 = arith.addf %33, %36 : vector<256xf32>
    %c1 = arith.constant 1 : index
    %c0_3 = arith.constant 0 : index
    %38 = vector.load %arg2[%c1, %c0_3] : memref<3x256xf32, #tpu.memory_space<vmem>>, vector<1x256xf32>
    %39 = vector.shape_cast %38 : vector<1x256xf32> to vector<256xf32>
    %40 = vector.shape_cast %37 : vector<256xf32> to vector<1x256xf32>
    tpu.vector_store %arg2[%c1, %c0_3], %40 {strides = array<i32>} : memref<3x256xf32, #tpu.memory_space<vmem>>, vector<1x256xf32>,
    %41 = vector.extract_strided_slice %0 {offsets = [14, 0], sizes = [1, 256], strides = [1, 1]} : vector<16x256xf32> to vector<1x256xf32>
    %42 = vector.shape_cast %41 : vector<1x256xf32> to vector<256xf32>
    %43 = vector.extract_strided_slice %0 {offsets = [6, 0], sizes = [1, 256], strides = [1, 1]} : vector<16x256xf32> to vector<1x256xf32>
    %44 = vector.shape_cast %43 : vector<1x256xf32> to vector<256xf32>
    %45 = arith.mulf %44, %2 : vector<256xf32>
    %46 = arith.addf %42, %45 : vector<256xf32>
    %47 = vector.extract_strided_slice %0 {offsets = [7, 0], sizes = [1, 256], strides = [1, 1]} : vector<16x256xf32> to vector<1x256xf32>
    %48 = vector.shape_cast %47 : vector<1x256xf32> to vector<256xf32>
    %49 = arith.mulf %48, %4 : vector<256xf32>
    %50 = arith.addf %46, %49 : vector<256xf32>
    %51 = vector.extract_strided_slice %0 {offsets = [8, 0], sizes = [1, 256], strides = [1, 1]} : vector<16x256xf32> to vector<1x256xf32>
    %52 = vector.shape_cast %51 : vector<1x256xf32> to vector<256xf32>
    %53 = arith.mulf %52, %6 : vector<256xf32>
    %54 = arith.addf %50, %53 : vector<256xf32>
    %c2 = arith.constant 2 : index
    %c0_4 = arith.constant 0 : index
    %55 = vector.load %arg2[%c2, %c0_4] : memref<3x256xf32, #tpu.memory_space<vmem>>, vector<1x256xf32>
    %56 = vector.shape_cast %55 : vector<1x256xf32> to vector<256xf32>
    %57 = vector.shape_cast %54 : vector<256xf32> to vector<1x256xf32>
    tpu.vector_store %arg2[%c2, %c0_4], %57 {strides = array<i32>} : memref<3x256xf32, #tpu.memory_space<vmem>>, vector<1x256xf32>,
    return
  }
  func.func @transform_0(%arg0: i32) -> (i32, i32) {
    %c0_i32 = arith.constant 0 : i32
    %c0_i32_0 = arith.constant 0 : i32
    return %c0_i32, %arg0 : i32, i32
  }
  func.func @transform_1(%arg0: i32) -> (i32, i32) {
    %c0_i32 = arith.constant 0 : i32
    %c0_i32_0 = arith.constant 0 : i32
    return %c0_i32, %arg0 : i32, i32
  }
}

</mosaic_0001>

<bundles_post_ra>
// kernel: tpu_custom_call.1
= control target key start
LH: loop header
LB: loop body
LE: loop exit
PB: predicated region body
PF: predicated region fallthrough
CT: control target
= control target key end

     0   :  { %6 = vsyncpa [#allocation3], 0  ;;  %s712_s0 = inlined_call_operand.hbm [shape: f32[16,512], index: 0, kind: input, shape index: {}]   ;;  %s713_s1 = inlined_call_operand.hbm [shape: f32[3,512], index: 1, kind: output, shape index: {}]  }
   0x1   :  { %8 = vsyncpa [#allocation3 + $0x1], 0 }
   0x2   :  { %9 = vsyncpa [#allocation4], 0 }
   0x3   :  { %11 = vsyncpa [#allocation4 + $0x1], 0  ;;  %s549_s6 = smov 0   ;;  %s551_s7 = smov 0  }
   0x4   :  { %s553_s8 = smov 0   ;;  %s555_s9 = smov 0  }
   0x5 LB: > { %s570_s10 = sadd.s32 4294967295, %s531_s9   ;;  %s367_s11 = sadd.s32 4294967294, %s531_s9   ;;  %s531_s9 = sphi %s555_s9, %s727_s9   ;;  %s527_s8 = sphi %s553_s8, %s726_s8   ;;  %s523_s7 = sphi %s551_s7, %s725_s7   ;;  %s519_s6 = sphi %s549_s6, %s724_s6  }
   0x6   : > { %s574_s12 = sadd.s32 1, %s531_s9   ;;  %s24_s13 = sadd.s32 1, %s527_s8 }
   0x7   : > { %s21_s14 = ssub.s32 %s531_s9, %s574_s12  ;;  %p31_p0 = scmp.ne.s32.totalorder %s527_s8, %s523_s7 }
   0x8   : > { %p22_p1 = scmp.eq.s32.totalorder %s21_s14, 0  ;;  %p32_p2 = scmp.eq.s32.totalorder %s531_s9, 0 }
   0x9   : > { %p37_p3 = scmp.ne.s32.totalorder %s523_s7, %s519_s6  ;;  %p38_p4 = scmp.eq.s32.totalorder %s570_s10, 0 }
   0xa   : > { %s586_s15 = scalar_select %p22_p1, %s527_s8, %s24_s13  }
   0xb   : > { %p588_p5 = por %p32_p2, %p31_p0  ;;  %p592_p6 = por %p38_p4, %p37_p3 }
   0xc   : > { %p61_p7 = scmp.eq.s32.totalorder %s570_s10, 1  ;;  %p67_p8 = scmp.eq.s32.totalorder %s367_s11, 1 }
   0xd   : > { %p397_p10 = scmp.lt.s32.totalorder %s531_s9, 2  ;;  %s87_s20 = sand.u32 1, %s527_s8  }
   0xe   : > { %p599_p11 = por %p61_p7, %p31_p0  ;;  %p603_p12 = por %p67_p8, %p37_p3 }
   0xf   : > { %s383_s21 = sshll.u32 %s531_s9, 8  ;;  %s370_s22 = sshll.u32 %s87_s20, 5 }
  0x10   : > { %s717_s18 = scalar_select %p599_p11, 1, 0 }
  0x11   : > { %s718_s19 = scalar_select %p603_p12, 1, 0 }
  0x12   : > { %s612_s25 = scalar_lea.hbm %s712_s0, %s383_s21  ;;  %s91_s26 = scalar_lea.vmem [#allocation2], %s370_s22 }
  0x13   : > { %s98_s27 = sshll.u32 %s91_s26, 4  ;;  %p616_p13 = pnand %p397_p10, %p588_p5  ;;  %s620_s27 = int_to_ptr.vmem [resolvable:$true] %s98_s27 }
  0x14   : > { %s623_s29 = scalar_lea.sflag [#allocation3], %s87_s20  ;;  %s435_s30 = scalar_lea.hbm %s612_s25, 512 }
  0x15   : > { %p436_p1 = scmp.ne.s32.totalorder %s612_s25, %s435_s30  ;;  %p437_p2 = pneg %p616_p13 }
  0x16   : > { %s440_s4 = scalar_lea.hbm %s712_s0, 1024  ;;  %p441_p5 = scmp.lt.u32.totalorder %s612_s25, %s712_s0 }
  0x17   : > { %p438_p3 = pnand %p437_p2, %p436_p1  ;;  %p442_p7 = scmp.lt.u32.totalorder %s440_s4, %s435_s30 }
  0x18   : > { %p444_p10 = scmp.lt.u32.totalorder %s435_s30, %s612_s25 }
  0x19   : > { %p439_p4 = pneg %p438_p3  ;;  %p443_p8 = por %p442_p7, %p441_p5 }
  0x1b   : > { %p445_p9 = por %p444_p10, %p443_p8 }
  0x1d   : > { %p446_p0 = pnand %p445_p9, %p439_p4 }
  0x1f   : > { %449 = shalt.err (!%p446_p0)
}
  0x20   : > { %s450_s13 = scalar_lea.vmem %s620_s27, 512  ;;  %s533_s14 = smov [#allocation2]  }
  0x21   : > { %p451_p1 = scmp.ne.s32.totalorder %s620_s27, %s450_s13  ;;  %s455_s16 = sshll.u32 %s533_s14, 4  ;;  %s456_s16 = int_to_ptr.vmem [resolvable:$false] %s455_s16 }
  0x22   : > { %s457_s20 = scalar_lea.vmem %s456_s16, 1024  ;;  %p458_p11 = scmp.lt.s32.totalorder %s620_s27, %s456_s16 }
  0x23   : > { %p453_p3 = pnand %p451_p1, %p437_p2  ;;  %p459_p5 = scmp.lt.s32.totalorder %s457_s20, %s450_s13 }
  0x25   : > { %p454_p12 = pneg %p453_p3  ;;  %p460_p7 = por %p459_p5, %p458_p11 }
  0x27   : > { %p461_p8 = pnand %p460_p7, %p454_p12 }
  0x29   : > { %464 = shalt.err (!%p461_p8)
}
  0x2a   : > { %s534_s21 = smov 512   ;;  %s535_s22 = smov 256  }
  0x2b   : > { %s536_s23 = smov 16   ;;  %p106_p9 = scmp.lt.s32.totalorder %s531_s9, 3 }
  0x2c   : > { %392 = dma.hbm_to_vmem [thread:$0]  (!%p616_p13), %s612_s25, 512, %s620_s27, %s623_s29, %s534_s21, %s535_s22, %s536_s23  }
  0x2d   : > { %p720_p0 = scmp.ge.s32.totalorder %s531_s9, 1 }
  0x2f   : > { %p107_p2 = pnand %p720_p0, %p106_p9 }
  0x30   : > { %s655_s24 = sand.u32 (!%p107_p2), 1, %s523_s7  }
  0x31   : > { %110 = sbr.rel (%p107_p2) target bundleno = 94 (0x5e), region = 24  ;;  %s374_s26 = sshll.u32 (!%p107_p2), %s655_s24, 5 }
  0x32   : > { %s113_s30 = scalar_lea.sflag (!%p107_p2), [#allocation3], %s655_s24  ;;  %s116_s2 = scalar_lea.vmem (!%p107_p2), [#allocation2], %s374_s26 }
  0x38   : > { %510 = dma.done.wait (%p592_p6), %s113_s30, 512  }
  0x39   : > { %512 = vsyncadd (%p592_p6), %s113_s30, 4294966784  ;;  %v175_v0 = vlaneseq  ;;  %v537_v1 = vmov 1966171168   ;;  %v137_v3 = vld [vmem:[%s116_s2] sm:$0xff]  ;;  %v139_v4 = vld [vmem:[%s116_s2 + $0x10] sm:$0xff]  ;;  %s375_s17 = sshll.u32 %s655_s24, 3 }
  0x3a   : > { %v173_v2 = vunpack.c.l.s4 %v537_v1  ;;  %v138_v5 = vld [vmem:[%s116_s2 + $0x8] sm:$0xff]  ;;  %v140_v6 = vld [vmem:[%s116_s2 + $0x18] sm:$0xff]  ;;  %v143_v7 = vrot.slane %v139_v4, 1  ;;  %v192_v9 = vrot.slane %v139_v4, 6  ;;  %v235_v10 = vrot.slane %v139_v4, 3  ;;  %s134_s25 = scalar_lea.vmem [#allocation5], %s375_s17 }
  0x3b   : > { %v176_v8 = vshrl.u32 %v175_v0, 7  ;;  %v144_v11 = vrot.slane %v140_v6, 1  ;;  %v193_v13 = vrot.slane %v140_v6, 6  ;;  %v236_v14 = vrot.slane %v140_v6, 3  ;;  %s297_s27 = sshll.u32 %s134_s25, 4  ;;  %s384_s28 = sshll.u32 %s570_s10, 7  ;;  %s665_s27 = int_to_ptr.vmem [resolvable:$true] %s297_s27 }
  0x3c   : > { %v174_v12 = vunpack.c.0.s8 %v173_v2  ;;  %v147_v15 = vmul.f32 %v143_v7, %v137_v3  ;;  %v196_v16 = vmul.f32 %v192_v9, %v137_v3  ;;  %v239_v17 = vmul.f32 %v235_v10, %v137_v3  ;;  %s670_s4 = scalar_lea.hbm %s713_s1, %s384_s28  ;;  %s283_s5 = scalar_lea.sflag [#allocation4], %s655_s24 }
  0x3d   : > { %v251_v18 = vmul.f32 %v235_v10, %v139_v4  ;;  %v148_v19 = vmul.f32 %v144_v11, %v138_v5  ;;  %v197_v20 = vmul.f32 %v193_v13, %v138_v5  ;;  %v240_v21 = vmul.f32 %v236_v14, %v138_v5  ;;  %s465_s11 = scalar_lea.vmem %s665_s27, 128  ;;  %p721_p11 = scmp.ne.s32.totalorder %s717_s18, 0 }
  0x3e   : > { %v252_v22 = vmul.f32 %v236_v14, %v140_v6  ;;  %v151_v23 = vrot.slane %v147_v15, 4  ;;  %v157_v24 = vrot.slane %v147_v15, 5  ;;  %v163_v25 = vrot.slane %v147_v15, 6  ;;  %p466_p6 = scmp.ne.s32.totalorder %s665_s27, %s465_s11  ;;  %s538_s10 = smov [#allocation5]  }
  0x3f   : > { %v200_v26 = vrot.slane %v196_v16, 6  ;;  %v152_v27 = vrot.slane %v148_v19, 4  ;;  %v158_v28 = vrot.slane %v148_v19, 5  ;;  %v164_v29 = vrot.slane %v148_v19, 6  ;;  %s469_s13 = sshll.u32 %s538_s10, 4  ;;  %s470_s13 = int_to_ptr.vmem [resolvable:$false] %s469_s13 }
  0x40   : > { %v201_v30 = vrot.slane %v197_v20, 6  ;;  %v155_v31 = vadd.f32 %v151_v23, %v139_v4  ;;  %v206_v33 = vrot.slane %v196_v16, 7  ;;  %v207_v34 = vrot.slane %v197_v20, 7  ;;  %p467_p12 = pnand %p466_p6, %p721_p11  ;;  %s471_s14 = scalar_lea.vmem %s470_s13, 256 }
  0x41   : > { %v204_v32 = vadd.f32 %v200_v26, %v139_v4  ;;  %v156_v35 = vadd.f32 %v152_v27, %v140_v6  ;;  %v241_v37 = vadd.f32 %v239_v17, %v139_v4  ;;  %v242_v38 = vadd.f32 %v240_v21, %v140_v6  ;;  %p472_p4 = scmp.lt.s32.totalorder %s665_s27, %s470_s13  ;;  %p473_p10 = scmp.lt.s32.totalorder %s471_s14, %s465_s11 }
  0x42   : > { %v205_v36 = vadd.f32 %v201_v30, %v140_v6  ;;  %v161_v39 = vadd.f32 %v157_v24, %v155_v31  ;;  %v245_v41 = vrot.slane %v239_v17, 1  ;;  %v246_v42 = vrot.slane %v240_v21, 1  ;;  %p468_p13 = pneg %p467_p12 }
  0x43   : > { %v210_v40 = vadd.f32 %v206_v33, %v204_v32  ;;  %v162_v43 = vadd.f32 %v158_v28, %v156_v35  ;;  %v255_v45 = vrot.slane %v251_v18, 2  ;;  %v256_v46 = vrot.slane %v252_v22, 2  ;;  %p474_p1 = por %p473_p10, %p472_p4 }
  0x44   : > { %v211_v44 = vadd.f32 %v207_v34, %v205_v36  ;;  %v167_v47 = vadd.f32 %v163_v25, %v161_v39  ;;  %v249_v49 = vadd.f32 %v245_v41, %v241_v37  ;;  %v250_v50 = vadd.f32 %v246_v42, %v242_v38 }
  0x45   : > { %v212_v48 = vadd.f32 %v210_v40, %v196_v16  ;;  %v168_v51 = vadd.f32 %v164_v29, %v162_v43  ;;  %v177_v52 = vsub.s32 %v174_v12, %v176_v8  ;;  %vm189_vm0 = vcmp.lt.s32.totalorder %v175_v0, 256  ;;  %p475_p3 = pnand %p474_p1, %p468_p13 }
  0x46   : > { %v213_v53 = vadd.f32 %v211_v44, %v197_v20  ;;  %v259_v54 = vadd.f32 %v255_v45, %v249_v49  ;;  %v260_v55 = vadd.f32 %v256_v46, %v250_v50 }
  0x47   : > { %v171_v56 = vcombine.high %v167_v47, %v168_v51 }
  0x48   : > { %v216_v57 = vcombine.high %v212_v48, %v213_v53  ;;  %v263_v58 = vcombine.high %v259_v54, %v260_v55 }
  0x49   : > { %v178_v59 = vrot.slane %v171_v56, %v177_v52 }
  0x4a   : > { %v223_v60 = vrot.slane %v216_v57, %v177_v52  ;;  %v270_v61 = vrot.slane %v263_v58, %v177_v52 }
  0x4b   : > { %v185_v62 = vrot.slane %v178_v59, %v177_v52 }
  0x4c   : > { %v224_v63 = vcombine.high %v223_v60, %v223_v60  ;;  %v277_v1 = vrot.slane %v270_v61, %v177_v52 }
  0x4d   : > { %191 = vst.msk [vmem:[%s134_s25] ss:$4 sm:$0x3] %vm189_vm0, %v185_v62 }
  0x4e   : > { %v231_v2 = vrot.slane %v224_v63, %v177_v52  ;;  %v278_v3 = vcombine.high %v277_v1, %v277_v1 }
  0x50   : > { %376 = vst.msk [vmem:[%s134_s25 + $0x1] ss:$4 sm:$0x3] %vm189_vm0, %v231_v2  ;;  %377 = vst.msk [vmem:[%s134_s25 + $0x2] ss:$4 sm:$0x3] %vm189_vm0, %v278_v3 }
  0x51   : > { %478 = shalt.err (!%p475_p3)
}
  0x52   : > { %s479_s16 = scalar_lea.hbm %s670_s4, 128  ;;  %s483_s22 = scalar_lea.hbm %s713_s1, 256 }
  0x53   : > { %p480_p5 = scmp.ne.s32.totalorder %s670_s4, %s479_s16  ;;  %p484_p9 = scmp.lt.u32.totalorder %s670_s4, %s713_s1 }
  0x54   : > { %p485_p0 = scmp.lt.u32.totalorder %s483_s22, %s479_s16  ;;  %p487_p6 = scmp.lt.u32.totalorder %s479_s16, %s670_s4 }
  0x55   : > { %p481_p7 = pnand %p480_p5, %p721_p11 }
  0x56   : > { %p486_p2 = por %p485_p0, %p484_p9 }
  0x57   : > { %p482_p8 = pneg %p481_p7 }
  0x58   : > { %p488_p12 = por %p487_p6, %p486_p2 }
  0x5a   : > { %p489_p13 = pnand %p488_p12, %p482_p8 }
  0x5c   : > { %492 = shalt.err (!%p489_p13)
}
  0x5d   : > { %387 = dma.vmem_to_hbm [thread:$0]  (%p721_p11), %s665_s27, 128, %s670_s4, %s283_s5  }
  0x5e PF: > { %s309_s26 = sand.u32 1, %s519_s6   ;;  %p722_p4 = scmp.ne.s32.totalorder %s718_s19, 0 }
  0x5f   : > { %p723_p10 = scmp.ge.s32.totalorder %s531_s9, 2  ;;  %s310_s30 = scalar_lea.sflag [#allocation4], %s309_s26 }
  0x61   : > { %p394_p1 = pnand %p723_p10, %p722_p4 }
  0x63   : > { %514 = dma.done.wait (!%p394_p1), %s310_s30, 128  }
  0x64   : > { %516 = vsyncadd (!%p394_p1), %s310_s30, 4294967168  ;;  %p14_p3 = scmp.ge.s32.totalorder %s574_s12, 4   ;;  %s724_s6 = smov %s523_s7 }
  0x65   : > { %s725_s7 = smov %s527_s8  ;;  %s726_s8 = smov %s586_s15 }
  0x66   : > { %s727_s9 = smov %s574_s12  ;;  %16 = sbr.rel (!%p14_p3) target bundleno = 5 (0x5), region = 71 }
  0x6d   :  { %315 = vsyncpa [#allocation3], 1 }
  0x6e   :  { %317 = vsyncpa [#allocation3 + $0x1], 1 }
  0x6f   :  { %318 = vsyncpa [#allocation4], 1 }
  0x70   :  { %320 = vsyncpa [#allocation4 + $0x1], 1 }

</bundles_post_ra>
